<compile_context>
chip_gen: v6e
topology: v6e:2x2x1
jax: 0.10.0
libtpu: 0.0.40
codegen_flags: <defaults>
</compile_context>

<pallas_src>
import functools

import numpy as np
import jax
import jax.numpy as jnp
from jax.experimental import pallas as pl
from jax.experimental.pallas import tpu as pltpu


def _copy_kernel(x_ref, o_ref):
    # Pure pass-through: MisoDecoder's forward performs no computation.
    o_ref[...] = x_ref[...]


def _min_sublane_rows(dtype) -> int:
    # Sub-32-bit dtypes pack along sublanes: native tile is (8 * pack, 128).
    itemsize = jnp.dtype(dtype).itemsize
    return 8 * max(1, 4 // max(1, itemsize))


def _choose_lane_width(total: int):
    """Pick a lane-dense width (multiple of 128) for flattening, or None."""
    candidates = (4096, 2048, 1024, 512, 256, 128)
    # Prefer a width that still leaves >= 8 rows (full sublane use).
    for lane in candidates:
        if total % lane == 0 and total // lane >= 8:
            return lane
    for lane in candidates:
        if total % lane == 0:
            return lane
    return None


def _tiled_identity_copy(x2d: jax.Array) -> jax.Array:
    rows, lanes = x2d.shape
    itemsize = jnp.dtype(x2d.dtype).itemsize
    min_rows = _min_sublane_rows(x2d.dtype)

    # ~2 MiB blocks: large enough to amortize the ~600-cycle per-step grid
    # overhead, small enough that double-buffered input + output (4 buffers)
    # stays well inside v7x's 64 MiB VMEM / 32 MiB default scoped limit.
    target_block_bytes = 2 * 1024 * 1024
    row_bytes = lanes * itemsize
    tm = (target_block_bytes // row_bytes) // min_rows * min_rows
    tm = max(min_rows, tm)
    tm = min(tm, rows)
    if rows % tm != 0 and rows > min_rows:
        # Keep the block (8,128)-aligned; Pallas masks the ragged tail block.
        tm = max(min_rows, (tm // min_rows) * min_rows)

    grid = (pl.cdiv(rows, tm),)
    block = (tm, lanes)

    # Explicit VMEM limit with headroom (2x double-buffered in + out).
    block_bytes = tm * lanes * itemsize
    vmem_limit = int(min(max(8 * block_bytes, 16 * 1024 * 1024),
                         48 * 1024 * 1024))

    return pl.pallas_call(
        _copy_kernel,
        out_shape=jax.ShapeDtypeStruct((rows, lanes), x2d.dtype),
        grid_spec=pltpu.PrefetchScalarGridSpec(
            num_scalar_prefetch=0,
            grid=grid,
            in_specs=[pl.BlockSpec(block, lambda i: (i, 0))],
            out_specs=pl.BlockSpec(block, lambda i: (i, 0)),
        ),
        compiler_params=pltpu.CompilerParams(
            dimension_semantics=("parallel",),
            vmem_limit_bytes=vmem_limit,
        ),
        # P8: the op is a no-op, so alias output 0 to input 0 — no extra HBM
        # allocation when the caller donates the buffer.
        input_output_aliases={0: 0},
    )(x2d)


@functools.partial(jax.jit, donate_argnums=(0,))
def _miso_decoder_forward_impl(inputs: jax.Array) -> jax.Array:
    orig_shape = inputs.shape
    total = int(np.prod(orig_shape)) if len(orig_shape) > 0 else 1

    if len(orig_shape) == 0 or total == 0:
        # Nothing to stream; identity of a scalar / empty tensor.
        return inputs

    lane = _choose_lane_width(total)
    if lane is not None:
        # Lane-dense slab: last dim is a large multiple of 128.
        x2d = inputs.reshape(total // lane, lane)
    else:
        # Fallback: keep the original trailing dim (full-extent block keeps
        # the (8,128) rule satisfied via the full-array-dim exception).
        last = orig_shape[-1]
        x2d = inputs.reshape(total // last, last)

    out2d = _tiled_identity_copy(x2d)
    return out2d.reshape(orig_shape)


def miso_decoder_forward(inputs: jax.Array) -> jax.Array:
    """Pallas equivalent of MisoDecoder.forward (abstract no-op identity)."""
    return _miso_decoder_forward_impl(inputs)


if __name__ == "__main__":
    key = jax.random.PRNGKey(0)
    # Small NCHW-style input consistent with a generic decoder "inputs" tensor.
    x = jax.random.normal(key, (2, 4, 16, 16), dtype=jnp.float32)

    # Snapshot to host before the call: the forward donates its argument so
    # the device buffer may be aliased to the output.
    x_host = np.asarray(jax.device_get(x))

    out = miso_decoder_forward(x)
    out = jax.block_until_ready(out)

    # The abstract forward does nothing; our kernel must be an exact identity.
    out_host = np.asarray(jax.device_get(out))
    assert out_host.shape == x_host.shape
    assert out_host.dtype == x_host.dtype
    assert np.array_equal(out_host, x_host)

    print("KERNEL_OK")
</pallas_src>

<mosaic_0001>
module attributes {stable_mosaic.version = 11 : i64} {
  func.func @_copy_kernel(%arg0: i32, %arg1: memref<8x256xf32, #tpu.memory_space<vmem>>, %arg2: memref<8x256xf32, #tpu.memory_space<vmem>>) attributes {dimension_semantics = [#tpu.dimension_semantics<parallel>], iteration_bounds = array<i64: 1>, scalar_prefetch = 0 : i64, scratch_operands = 0 : i64, tpu.core_type = #tpu.core_type<tc>, window_params = [{transform_indices = @transform_0, window_bounds = array<i64: 8, 256>}, {transform_indices = @transform_1, window_bounds = array<i64: 8, 256>}]} {
    %c0 = arith.constant 0 : index
    %c0_0 = arith.constant 0 : index
    %0 = vector.load %arg1[%c0, %c0_0] : memref<8x256xf32, #tpu.memory_space<vmem>>, vector<8x256xf32>
    %c0_1 = arith.constant 0 : index
    %c0_2 = arith.constant 0 : index
    %1 = vector.load %arg2[%c0_1, %c0_2] : memref<8x256xf32, #tpu.memory_space<vmem>>, vector<8x256xf32>
    tpu.vector_store %arg2[%c0_1, %c0_2], %0 {strides = array<i32>} : memref<8x256xf32, #tpu.memory_space<vmem>>, vector<8x256xf32>,
    return
  }
  func.func @transform_0(%arg0: i32) -> (i32, i32) {
    %c0_i32 = arith.constant 0 : i32
    %c0_i32_0 = arith.constant 0 : i32
    return %arg0, %c0_i32 : i32, i32
  }
  func.func @transform_1(%arg0: i32) -> (i32, i32) {
    %c0_i32 = arith.constant 0 : i32
    %c0_i32_0 = arith.constant 0 : i32
    return %arg0, %c0_i32 : i32, i32
  }
}

</mosaic_0001>

<bundles_post_ra>
// kernel: _miso_decoder_forward_impl.1
= control target key start
LH: loop header
LB: loop body
LE: loop exit
PB: predicated region body
PF: predicated region fallthrough
CT: control target
= control target key end

     0   :  { %s38_s0 = inlined_call_operand.vmem [shape: f32[8,256], index: 0, kind: input, shape index: {}, may-alias: {0,1}]   ;;  %s39_s1 = inlined_call_operand.vmem [shape: f32[8,256], index: 1, kind: output, shape index: {}, may-alias: {0,1}]  }
   0x1   :  { %v8_v0 = vld [vmem:[%s38_s0] sm:$0xff]  ;;  %v9_v1 = vld [vmem:[%s38_s0 + $0x8] sm:$0xff] }
   0x2   :  { %10 = vst [vmem:[%s39_s1] sm:$0xff] %v8_v0  ;;  %11 = vst [vmem:[%s39_s1 + $0x8] sm:$0xff] %v9_v1 }

</bundles_post_ra>
